<compile_context>
chip_gen: v7x
topology: tpu7x:2x2x1
jax: 0.10.0
libtpu: 0.0.40
codegen_flags: <defaults>
</compile_context>

<pallas_src>
import functools
import numpy as np
import jax
import jax.numpy as jnp
from jax.experimental import pallas as pl
from jax.experimental.pallas import tpu as pltpu


# ------------------------------- helpers ----------------------------------

def _round_up(x, m):
    return ((x + m - 1) // m) * m


def _pick_tile(n_rows, bytes_per_row, target_bytes=4 << 20, max_tile=16384):
    """Row tile sized from a byte budget (per-step pipeline overhead ~0.35us,
    so target multiple MiB per block), multiple of 8, and capped so the grid
    has >=2 steps when possible (lets v7x shard across both TensorCores)."""
    n = max(int(n_rows), 1)
    t = max(int(target_bytes) // max(int(bytes_per_row), 1), 8)
    t = min(t, max_tile)
    half = _round_up(max((n + 1) // 2, 1), 8)      # keep >= 2 grid steps
    t = min(t, half)
    t = _round_up(min(t, _round_up(n, 8)), 8)
    n_pad = _round_up(n, t)
    return t, n_pad


def _vmem_limit(block_bytes):
    """2x (double-buffered) block bytes + margin, clamped to a budget that is
    safe on v7x (64 MiB/TC) as well as v5e/v6e (128 MiB)."""
    need = 2 * int(block_bytes) + (2 << 20)
    return int(min(max(need, 8 << 20), 32 << 20))


# ----------------------------- Pallas kernels -----------------------------

def _linear_kernel(x_ref, w_ref, b_ref, o_ref):
    o_ref[...] = jnp.dot(x_ref[...], w_ref[...],
                         preferred_element_type=jnp.float32) + b_ref[...]


def pallas_linear(x, w, b):
    """y = x @ w + b  (nn.Linear with weight stored as (in, out)), row-tiled."""
    x = x.astype(jnp.float32)
    M, K = x.shape
    N = w.shape[1]
    tile_m, M_pad = _pick_tile(M, 4 * (K + N))
    if M_pad != M:
        x = jnp.pad(x, ((0, M_pad - M), (0, 0)))
    block_bytes = 4 * (tile_m * K + K * N + N + tile_m * N)
    y = pl.pallas_call(
        _linear_kernel,
        out_shape=jax.ShapeDtypeStruct((M_pad, N), jnp.float32),
        grid=(M_pad // tile_m,),
        in_specs=[
            pl.BlockSpec((tile_m, K), lambda i: (i, 0)),
            pl.BlockSpec((K, N), lambda i: (0, 0)),
            pl.BlockSpec((1, N), lambda i: (0, 0)),
        ],
        out_specs=pl.BlockSpec((tile_m, N), lambda i: (i, 0)),
        compiler_params=pltpu.CompilerParams(
            dimension_semantics=("parallel",),
            vmem_limit_bytes=_vmem_limit(block_bytes)),
    )(x, w, b.reshape(1, N))
    return y[:M]


def _edge_hidden_logit_kernel(ed_ref, fr_ref, wcat_ref, o_ref, *, L, D, Dh, slope):
    """Fused RotatE metapath encoder (mean over L) + attention logits.

    ed_ref : (tile_e, L*D) bf16, per-position node features in [re|im] layout.
    fr_ref : (1, L*D) f32, cumulative rotation factors laid out to match ed.
    wcat   : (2D, NH) f32, [attn1_w (block layout) ; attn2^T (block layout)].
    o_ref  : (tile_e, D + NH) f32 = [hidden_re | hidden_im | leaky_relu(a)].
    """
    ed = ed_ref[...].astype(jnp.float32)      # single load, upcast once (v5e-safe)
    fr_all = fr_ref[...]
    inv_l = jnp.float32(1.0 / L)
    tile_e = ed.shape[0]
    acc_re = jnp.zeros((tile_e, Dh), jnp.float32)
    acc_im = jnp.zeros((tile_e, Dh), jnp.float32)
    for l in range(L):                         # L is small and static
        base = l * D
        er = ed[:, base:base + Dh]
        ei = ed[:, base + Dh:base + D]
        fre = fr_all[:, base:base + Dh]
        fim = fr_all[:, base + Dh:base + D]
        acc_re = acc_re + (er * fre - ei * fim)
        acc_im = acc_im + (er * fim + ei * fre)
    hid_re = acc_re * inv_l
    hid_im = acc_im * inv_l
    # center node (attn1 operand) is the last metapath position, already here.
    center = ed[:, (L - 1) * D:L * D]
    # single MXU matmul: [center | hidden_re | hidden_im] @ [w1 ; attn2^T]
    xcat = jnp.concatenate([center, hid_re, hid_im], axis=-1)       # (tile_e, 2D)
    a = jnp.dot(xcat, wcat_ref[...], preferred_element_type=jnp.float32)
    a = jnp.where(a > 0, a, slope * a)
    o_ref[...] = jnp.concatenate([hid_re, hid_im, a], axis=-1)


def pallas_edge_hidden_logits(ed_flat, fr_flat, w_cat, L, D, num_heads, slope=0.01):
    E = ed_flat.shape[0]
    Dh = D // 2
    LD = L * D
    out_w = D + num_heads
    bytes_per_row = 2 * LD + 4 * out_w          # bf16 in + f32 out
    tile_e, E_pad = _pick_tile(E, bytes_per_row)
    if E_pad != E:
        ed_flat = jnp.pad(ed_flat, ((0, E_pad - E), (0, 0)))
    block_bytes = tile_e * bytes_per_row + 4 * (LD + 2 * D * num_heads)
    kernel = functools.partial(_edge_hidden_logit_kernel, L=L, D=D, Dh=Dh, slope=slope)
    out = pl.pallas_call(
        kernel,
        out_shape=jax.ShapeDtypeStruct((E_pad, out_w), jnp.float32),
        grid=(E_pad // tile_e,),
        in_specs=[
            pl.BlockSpec((tile_e, LD), lambda i: (i, 0)),
            pl.BlockSpec((1, LD), lambda i: (0, 0)),
            pl.BlockSpec((2 * D, num_heads), lambda i: (0, 0)),
        ],
        out_specs=pl.BlockSpec((tile_e, out_w), lambda i: (i, 0)),
        compiler_params=pltpu.CompilerParams(
            dimension_semantics=("parallel",),
            vmem_limit_bytes=_vmem_limit(block_bytes)),
    )(ed_flat, fr_flat, w_cat)
    return out[:E, :D], out[:E, D:]


def _beta_logit_kernel(x_ref, w1_ref, b1_ref, w2_ref, o_ref, acc_ref, *, rows, tile_b):
    # fused: tanh(fc1(x)) -> mean over rows (masked, accumulated) -> fc2 dot
    i = pl.program_id(0)

    @pl.when(i == 0)
    def _():
        acc_ref[...] = jnp.zeros_like(acc_ref)

    fc1 = jnp.tanh(jnp.dot(x_ref[...], w1_ref[...],
                           preferred_element_type=jnp.float32) + b1_ref[...])
    row_id = i * tile_b + jax.lax.broadcasted_iota(jnp.int32, fc1.shape, 0)
    fc1 = jnp.where(row_id < rows, fc1, 0.0)          # mask padded rows (1/B mean)
    acc_ref[...] += jnp.sum(fc1, axis=0, keepdims=True)

    @pl.when(i == pl.num_programs(0) - 1)
    def _():
        m = acc_ref[...] * jnp.float32(1.0 / rows)    # (1, A)
        o_ref[...] = jnp.sum(m * w2_ref[...], keepdims=True)   # (1, 1)


def pallas_beta_logit(x, w1, b1, w2):
    x = x.astype(jnp.float32)
    B, K = x.shape
    A = w1.shape[1]
    tile_b, B_pad = _pick_tile(B, 4 * (K + A))
    if B_pad != B:
        x = jnp.pad(x, ((0, B_pad - B), (0, 0)))
    block_bytes = 4 * (tile_b * K + K * A + 2 * A + tile_b * A)
    kernel = functools.partial(_beta_logit_kernel, rows=B, tile_b=tile_b)
    out = pl.pallas_call(
        kernel,
        out_shape=jax.ShapeDtypeStruct((1, 1), jnp.float32),
        grid=(B_pad // tile_b,),
        in_specs=[
            pl.BlockSpec((tile_b, K), lambda i: (i, 0)),
            pl.BlockSpec((K, A), lambda i: (0, 0)),
            pl.BlockSpec((1, A), lambda i: (0, 0)),
            pl.BlockSpec((1, A), lambda i: (0, 0)),
        ],
        out_specs=pl.BlockSpec((1, 1), lambda i: (0, 0)),
        scratch_shapes=[pltpu.VMEM((1, A), jnp.float32)],
        compiler_params=pltpu.CompilerParams(
            dimension_semantics=("arbitrary",),
            vmem_limit_bytes=_vmem_limit(block_bytes)),
    )(x, w1, b1.reshape(1, A), w2.reshape(1, A))
    return out[0, 0]


# ------------------------------ model (glue) ------------------------------

def build_rotation_factors(etypes, r_vec, L, Dh):
    """Cumulative RotatE rotation from each metapath position to the tail."""
    rn = r_vec / jnp.clip(jnp.linalg.norm(r_vec, axis=-1, keepdims=True), 1e-12)
    r_full_re = jnp.stack([rn[:, :, 0], rn[:, :, 0]], axis=1).reshape(-1, Dh)
    r_full_im = jnp.stack([rn[:, :, 1], -rn[:, :, 1]], axis=1).reshape(-1, Dh)
    fr_re = [None] * L
    fr_im = [None] * L
    fr_re[L - 1] = jnp.ones((Dh,), jnp.float32)
    fr_im[L - 1] = jnp.zeros((Dh,), jnp.float32)
    for i in range(L - 2, -1, -1):
        if etypes[i] is None:
            fr_re[i] = fr_re[i + 1]
            fr_im[i] = fr_im[i + 1]
        else:
            rre = r_full_re[etypes[i]]
            rim = r_full_im[etypes[i]]
            fr_re[i] = fr_re[i + 1] * rre - fr_im[i + 1] * rim
            fr_im[i] = fr_re[i + 1] * rim + fr_im[i + 1] * rre
    return jnp.stack(fr_re, axis=0), jnp.stack(fr_im, axis=0)   # (L, Dh) each


def metapath_specific_forward(mp_params, etypes, r_vec, feat_blk_bf16,
                              indices, dst, num_local, target_idx, num_heads,
                              blk2int):
    E, L = indices.shape
    D = feat_blk_bf16.shape[1]
    Dh = D // 2

    fr_re, fr_im = build_rotation_factors(etypes, r_vec, L, Dh)
    fr_flat = jnp.concatenate([fr_re, fr_im], axis=1).reshape(1, L * D)

    # single bf16 gather of the whole metapath instance (already in [re|im]
    # block layout), flattened to (E, L*D) so kernel loads are lane-dense.
    # TODO(synk): move this gather into the Pallas pipeline (scalar-prefetched
    #             indices + row DMAs) to avoid materializing it in HBM.
    ed_flat = feat_blk_bf16[indices].reshape(E, L * D)

    # attn1 acts on the center node (last metapath position, already inside
    # ed_flat), attn2 on the RotatE hidden state; both weights permuted into
    # the block layout and fused into a single (2D, NH) MXU operand.
    w1_blk = mp_params["attn1_w"][blk2int, :]                  # (D, NH)
    a2t_blk = mp_params["attn2"][:, blk2int].T                 # (D, NH)
    w_cat = jnp.concatenate([w1_blk, a2t_blk], axis=0)         # (2D, NH)

    hidden, a = pallas_edge_hidden_logits(ed_flat, fr_flat, w_cat, L, D, num_heads)

    # edge softmax per destination node + weighted aggregation
    # (data-dependent scatter -> plain JAX segment ops); attn_drop = identity.
    # TODO(synk): sorted-by-dst Pallas segment softmax/aggregation kernel.
    a_max = jax.ops.segment_max(a, dst, num_segments=num_local)
    a_max = jnp.where(jnp.isfinite(a_max), a_max, 0.0)
    e = jnp.exp(a - a_max[dst])
    denom = jax.ops.segment_sum(e, dst, num_segments=num_local)
    attn = e / jnp.maximum(denom[dst], 1e-12)
    # per-head features are the same `hidden`; aggregate one head at a time so
    # no (E, NH, D) intermediate is materialized at once.
    ft = jnp.stack(
        [jax.ops.segment_sum(attn[:, h:h + 1] * hidden, dst, num_segments=num_local)
         for h in range(num_heads)], axis=1)                   # (num_local, NH, D)
    ret = ft[target_idx]                                       # (B, NH, D) block layout
    return ret


def ctr_ntype_forward(params, etypes_list, r_vec, feat_blk_bf16, indices_list,
                      dst_list, num_local_list, target_idx_list, num_heads,
                      blk2int, unperm):
    D = feat_blk_bf16.shape[1]
    metapath_outs = []
    for p, mp_params in enumerate(params["metapath_layers"]):
        ret = metapath_specific_forward(mp_params, etypes_list[p], r_vec,
                                        feat_blk_bf16, indices_list[p],
                                        dst_list[p], num_local_list[p],
                                        target_idx_list[p], num_heads, blk2int)
        ret = ret[..., unperm]                 # small un-permute back to interleaved
        metapath_outs.append(jax.nn.elu(ret).reshape(-1, num_heads * D))
    beta_logits = [pallas_beta_logit(mo, params["fc1_w"], params["fc1_b"],
                                     params["fc2_w"]) for mo in metapath_outs]
    beta = jax.nn.softmax(jnp.stack(beta_logits))
    h = sum(beta[i] * metapath_outs[i] for i in range(len(metapath_outs)))
    return h


def magnn_ep_forward(params, inputs, hidden_dim, num_heads):
    (dst_lists, features_list, type_mask, indices_lists, target_idx_lists,
     num_local_lists, etypes_lists) = inputs
    N = type_mask.shape[0]
    D = hidden_dim
    Dh = D // 2
    transformed = jnp.zeros((N, D), jnp.float32)
    for i, fc in enumerate(params["fc_list"]):
        node_indices = np.where(type_mask == i)[0]
        y = pallas_linear(features_list[i], fc["w"], fc["b"])
        transformed = transformed.at[node_indices].set(y)
    # feat_drop: identity (eval mode)

    # node table permuted once into the [re | im] block layout and stored as
    # bf16 (storage/DMA only; kernels upcast to f32 before any arithmetic).
    blk2int = np.concatenate([np.arange(0, D, 2), np.arange(1, D, 2)])
    unperm = np.array([(k // 2) if k % 2 == 0 else (Dh + k // 2) for k in range(D)])
    feat_blk_bf16 = transformed[:, blk2int].astype(jnp.bfloat16)

    h_user = ctr_ntype_forward(params["user_layer"], etypes_lists[0],
                               params["r_vec"], feat_blk_bf16, indices_lists[0],
                               dst_lists[0], num_local_lists[0],
                               target_idx_lists[0], num_heads, blk2int, unperm)
    h_item = ctr_ntype_forward(params["item_layer"], etypes_lists[1],
                               params["r_vec"], feat_blk_bf16, indices_lists[1],
                               dst_lists[1], num_local_lists[1],
                               target_idx_lists[1], num_heads, blk2int, unperm)
    logits_user = pallas_linear(h_user, params["fc_user_w"], params["fc_user_b"])
    logits_item = pallas_linear(h_item, params["fc_item_w"], params["fc_item_b"])
    return ([logits_user, logits_item], [h_user, h_item])


# ---------------------------- parameter init ------------------------------

def _xavier(key, fan_in, fan_out, shape, gain=1.414):
    std = gain * np.sqrt(2.0 / (fan_in + fan_out))
    return (std * jax.random.normal(key, shape)).astype(jnp.float32)


def init_params(key, feats_dim_list, hidden_dim, out_dim, num_heads, attn_vec_dim,
                num_edge_type, num_metapaths_list):
    keys = iter(jax.random.split(key, 128))
    params = {"fc_list": []}
    for fd in feats_dim_list:
        params["fc_list"].append({
            "w": _xavier(next(keys), fd, hidden_dim, (fd, hidden_dim)),
            "b": 0.01 * jax.random.normal(next(keys), (hidden_dim,), jnp.float32),
        })
    params["r_vec"] = _xavier(next(keys), num_edge_type // 2, hidden_dim,
                              (num_edge_type // 2, hidden_dim // 2, 2))

    def ctr_params(nmp):
        layers = []
        for _ in range(nmp):
            layers.append({
                "attn1_w": _xavier(next(keys), hidden_dim, num_heads,
                                   (hidden_dim, num_heads)),
                "attn2": _xavier(next(keys), num_heads, hidden_dim,
                                 (num_heads, hidden_dim)),
            })
        return {
            "metapath_layers": layers,
            "fc1_w": _xavier(next(keys), hidden_dim * num_heads, attn_vec_dim,
                             (hidden_dim * num_heads, attn_vec_dim)),
            "fc1_b": 0.01 * jax.random.normal(next(keys), (attn_vec_dim,), jnp.float32),
            "fc2_w": _xavier(next(keys), attn_vec_dim, 1, (attn_vec_dim,)),
        }

    params["user_layer"] = ctr_params(num_metapaths_list[0])
    params["item_layer"] = ctr_params(num_metapaths_list[1])
    params["fc_user_w"] = _xavier(next(keys), hidden_dim * num_heads, out_dim,
                                  (hidden_dim * num_heads, out_dim))
    params["fc_user_b"] = 0.01 * jax.random.normal(next(keys), (out_dim,), jnp.float32)
    params["fc_item_w"] = _xavier(next(keys), hidden_dim * num_heads, out_dim,
                                  (hidden_dim * num_heads, out_dim))
    params["fc_item_b"] = 0.01 * jax.random.normal(next(keys), (out_dim,), jnp.float32)
    return params


# --------------------------------- main ------------------------------------

if __name__ == "__main__":
    key = jax.random.PRNGKey(0)
    feats_dim_list = [10, 12]
    hidden_dim = 32
    out_dim = 16
    num_heads = 4
    attn_vec_dim = 24
    num_edge_type = 4
    num_metapaths_list = [2, 2]
    etypes_lists = [[[0, 1], [2, 3]], [[1, 0], [3, 2]]]

    n_user, n_item = 8, 8
    N = n_user + n_item
    type_mask = np.concatenate([np.zeros(n_user, np.int32), np.ones(n_item, np.int32)])

    k_feat0, k_feat1, k_param = jax.random.split(key, 3)
    features_list = [
        jax.random.normal(k_feat0, (n_user, feats_dim_list[0]), jnp.float32),
        jax.random.normal(k_feat1, (n_item, feats_dim_list[1]), jnp.float32),
    ]

    # synthetic minibatch graph data (per node type, per metapath)
    E, L, num_local, B = 12, 3, 8, 4
    rng = np.random.RandomState(0)

    def make_graph_data():
        indices_list, dst_list, num_local_list, tgt_list = [], [], [], []
        for _ in range(2):
            indices_list.append(jnp.asarray(rng.randint(0, N, size=(E, L)), jnp.int32))
            dst_list.append(jnp.asarray(rng.randint(0, num_local, size=(E,)), jnp.int32))
            num_local_list.append(num_local)
            tgt_list.append(jnp.asarray(rng.randint(0, num_local, size=(B,)), jnp.int32))
        return indices_list, dst_list, num_local_list, tgt_list

    u_idx, u_dst, u_nl, u_tgt = make_graph_data()
    i_idx, i_dst, i_nl, i_tgt = make_graph_data()

    params = init_params(k_param, feats_dim_list, hidden_dim, out_dim, num_heads,
                         attn_vec_dim, num_edge_type, num_metapaths_list)

    inputs = ([u_dst, i_dst], features_list, type_mask,
              [u_idx, i_idx], [u_tgt, i_tgt], [u_nl, i_nl], etypes_lists)

    (logits, hs) = magnn_ep_forward(params, inputs, hidden_dim, num_heads)
    jax.block_until_ready(logits[0])
    jax.block_until_ready(logits[1])
    jax.block_until_ready(hs[0])
    jax.block_until_ready(hs[1])

    assert logits[0].shape == (B, out_dim) and logits[1].shape == (B, out_dim)
    assert hs[0].shape == (B, num_heads * hidden_dim)
    assert hs[1].shape == (B, num_heads * hidden_dim)
    assert all(bool(jnp.all(jnp.isfinite(t))) for t in logits + hs)
    print("KERNEL_OK")
</pallas_src>

<mosaic_0001>
module attributes {stable_mosaic.version = 11 : i64} {
  func.func @_linear_kernel(%arg0: i32, %arg1: memref<8x10xf32, #tpu.memory_space<vmem>>, %arg2: memref<10x32xf32, #tpu.memory_space<vmem>>, %arg3: memref<1x32xf32, #tpu.memory_space<vmem>>, %arg4: memref<8x32xf32, #tpu.memory_space<vmem>>) attributes {dimension_semantics = [#tpu.dimension_semantics<parallel>], iteration_bounds = array<i64: 1>, scalar_prefetch = 0 : i64, scratch_operands = 0 : i64, tpu.core_type = #tpu.core_type<tc>, window_params = [{transform_indices = @transform_0, window_bounds = array<i64: 8, 10>}, {pipeline_mode = #tpu.pipeline_mode<synchronous>, transform_indices = @transform_1, window_bounds = array<i64: 10, 32>}, {pipeline_mode = #tpu.pipeline_mode<synchronous>, transform_indices = @transform_2, window_bounds = array<i64: 1, 32>}, {transform_indices = @transform_3, window_bounds = array<i64: 8, 32>}]} {
    %c0 = arith.constant 0 : index
    %c0_0 = arith.constant 0 : index
    %0 = vector.load %arg1[%c0, %c0_0] : memref<8x10xf32, #tpu.memory_space<vmem>>, vector<8x10xf32>
    %c0_1 = arith.constant 0 : index
    %c0_2 = arith.constant 0 : index
    %1 = vector.load %arg2[%c0_1, %c0_2] : memref<10x32xf32, #tpu.memory_space<vmem>>, vector<10x32xf32>
    %cst = arith.constant dense<0.000000e+00> : vector<8x32xf32>
    %2 = tpu.matmul %0, %1, %cst {dimension_numbers = #tpu.dot_dimension_numbers<[1], [0], [0], [1], [0, 0, 1, 1], [], []>} : vector<8x10xf32>, vector<10x32xf32>, vector<8x32xf32> -> vector<8x32xf32>
    %c0_3 = arith.constant 0 : index
    %c0_4 = arith.constant 0 : index
    %3 = vector.load %arg3[%c0_3, %c0_4] : memref<1x32xf32, #tpu.memory_space<vmem>>, vector<1x32xf32>
    %4 = vector.broadcast %3 : vector<1x32xf32> to vector<8x32xf32>
    %5 = arith.addf %2, %4 : vector<8x32xf32>
    %c0_5 = arith.constant 0 : index
    %c0_6 = arith.constant 0 : index
    %6 = vector.load %arg4[%c0_5, %c0_6] : memref<8x32xf32, #tpu.memory_space<vmem>>, vector<8x32xf32>
    tpu.vector_store %arg4[%c0_5, %c0_6], %5 {strides = array<i32>} : memref<8x32xf32, #tpu.memory_space<vmem>>, vector<8x32xf32>,
    return
  }
  func.func @transform_0(%arg0: i32) -> (i32, i32) {
    %c0_i32 = arith.constant 0 : i32
    %c0_i32_0 = arith.constant 0 : i32
    return %arg0, %c0_i32 : i32, i32
  }
  func.func @transform_1(%arg0: i32) -> (i32, i32) {
    %c0_i32 = arith.constant 0 : i32
    %c0_i32_0 = arith.constant 0 : i32
    %c0_i32_1 = arith.constant 0 : i32
    return %c0_i32, %c0_i32_0 : i32, i32
  }
  func.func @transform_2(%arg0: i32) -> (i32, i32) {
    %c0_i32 = arith.constant 0 : i32
    %c0_i32_0 = arith.constant 0 : i32
    %c0_i32_1 = arith.constant 0 : i32
    return %c0_i32, %c0_i32_0 : i32, i32
  }
  func.func @transform_3(%arg0: i32) -> (i32, i32) {
    %c0_i32 = arith.constant 0 : i32
    %c0_i32_0 = arith.constant 0 : i32
    return %arg0, %c0_i32 : i32, i32
  }
}

</mosaic_0001>

<bundles_post_ra>
// kernel: tpu_custom_call.1
= control target key start
LH: loop header
LB: loop body
LE: loop exit
PB: predicated region body
PF: predicated region fallthrough
CT: control target
= control target key end

     0   :  { %8 = vsyncpa [#allocation3], 0  ;;  %s320_s0 = inlined_call_operand.hbm [shape: f32[8,10], index: 0, kind: input, shape index: {}]   ;;  %s321_s1 = inlined_call_operand.hbm [shape: f32[10,32], index: 1, kind: input, shape index: {}]   ;;  %s322_s2 = inlined_call_operand.vmem [shape: f32[1,32], index: 2, kind: input, shape index: {}]   ;;  %s323_s3 = inlined_call_operand.hbm [shape: f32[8,32], index: 3, kind: output, shape index: {}]  }
   0x1   :  { %9 = vsyncpa [#allocation6], 0 }
   0x2   :  { %10 = vsyncpa [#allocation4], 0  ;;  %s245_s12 = smov [#allocation2]   ;;  %s246_s14 = smov [#allocation5]  }
   0x3   :  { %s17_s13 = sshll.u32 %s245_s12, 4  ;;  %s26_s15 = sshll.u32 %s246_s14, 4  ;;  %s18_s13 = int_to_ptr.vmem [resolvable:$true] %s17_s13  ;;  %s274_s15 = int_to_ptr.vmem [resolvable:$true] %s26_s15 }
   0x4   :  { %s173_s18 = scalar_lea.hbm %s320_s0, 128 }
   0x5   :  { %p174_p0 = scmp.ne.s32.totalorder %s320_s0, %s173_s18  ;;  %p177_p1 = scmp.lt.u32.totalorder %s173_s18, %s320_s0 }
   0x7   :  { %p179_p2 = pnand %p177_p1, %p174_p0 }
   0x9   :  { %182 = shalt.err (!%p179_p2)
}
   0xa   :  { %s183_s23 = scalar_lea.vmem %s18_s13, 128  ;;  %p188_p4 = scmp.lt.s32.totalorder %s18_s13, %s18_s13 }
   0xb   :  { %p184_p3 = scmp.ne.s32.totalorder %s18_s13, %s183_s23  ;;  %p189_p5 = scmp.lt.s32.totalorder %s183_s23, %s183_s23 }
   0xd   :  { %p190_p6 = por %p189_p5, %p188_p4 }
   0xf   :  { %p191_p7 = pnand %p190_p6, %p184_p3 }
  0x11   :  { %194 = shalt.err (!%p191_p7)
}
  0x12   :  { %20 = dma.hbm_to_vmem [thread:$0]  %s320_s0, 128, %s18_s13, [#allocation3]  }
  0x13   :  { %s195_s28 = scalar_lea.hbm %s321_s1, 256 }
  0x14   :  { %p196_p8 = scmp.ne.s32.totalorder %s321_s1, %s195_s28  ;;  %p199_p9 = scmp.lt.u32.totalorder %s195_s28, %s321_s1 }
  0x16   :  { %p201_p10 = pnand %p199_p9, %p196_p8 }
  0x18   :  { %204 = shalt.err (!%p201_p10)
}
  0x19   :  { %s205_s6 = scalar_lea.vmem %s274_s15, 256  ;;  %p210_p12 = scmp.lt.s32.totalorder %s274_s15, %s274_s15 }
  0x1a   :  { %p206_p11 = scmp.ne.s32.totalorder %s274_s15, %s205_s6  ;;  %p211_p13 = scmp.lt.s32.totalorder %s205_s6, %s205_s6 }
  0x1c   :  { %p212_p0 = por %p211_p13, %p210_p12 }
  0x1e   :  { %p213_p1 = pnand %p212_p0, %p206_p11 }
  0x20   :  { %216 = shalt.err (!%p213_p1)
}
  0x21   :  { %s247_s0 = smov 128   ;;  %s248_s7 = smov 8  }
  0x22   :  { %32 = dma.hbm_to_vmem [thread:$0]  %s321_s1, 256, %s274_s15, [#allocation6], %s247_s0, %s247_s0, %s248_s7  }
  0x23   :  { %239 = dma.done.wait [#allocation3], 128  }
  0x24   :  { %240 = vsyncadd [#allocation3], 4294967168 }
  0x25   :  { %241 = dma.done.wait [#allocation6], 256  }
  0x26   :  { %242 = vsyncadd [#allocation6], 4294967040  ;;  %v249_v0 = vmov 0.0|0.0   ;;  %vm250_vm0 = vmmov 0   ;;  %v251_v1 = vmov 0.0   ;;  %vm55_vm1 = vcmask 1041408  }
  0x27   :  { %160 = vmatprep.subr.bf16.mxu0 %v249_v0  ;;  %157 = vmatprep.mubr.msk.f32.mxu0 %vm250_vm0, %v251_v1  ;;  %v42_v2 = vld [vmem:[#allocation5] sm:$0xff]  ;;  %v43_v3 = vld [vmem:[#allocation5 + $0x8] sm:$0x3]  ;;  %vm252_vm2 = vmmov 1   ;;  %v41_v5 = vld [vmem:[#allocation2] sm:$0xff]  ;;  %vm51_vm4 = vcmask 80896  }
  0x28   :  { %vm162_vm3 = vmpackc.low %vm55_vm1, %vm252_vm2  ;;  %v161_v4 = vpack.c.bf16 %v43_v3, %v42_v2  ;;  %v147_v6 = vld [vmem:[%s322_s2] ss:$0 sm:$0xff]  ;;  %s253_s11 = smov [#allocation7]   ;;  %vm129_vm5 = vcmask 261120  }
  0x29   :  { %s137_s12 = sshll.u32 %s253_s11, 4  ;;  %s138_s12 = int_to_ptr.vmem [resolvable:$true] %s137_s12 }
  0x2a   :  { %163 = vmatpush3.bf16.msk.msra.mxu0 %vm162_vm3, %v161_v4  ;;  %s217_s13 = scalar_lea.vmem %s138_s12, 128  ;;  %p222_p3 = scmp.lt.s32.totalorder %s138_s12, %s138_s12 }
  0x2b   :  { %p218_p2 = scmp.ne.s32.totalorder %s138_s12, %s217_s13  ;;  %p223_p4 = scmp.lt.s32.totalorder %s217_s13, %s217_s13 }
  0x2d   :  { %158 = vmatmul.mubr.msk.f32.vlgmr.msra.gmra.mrb[0].mxu0 %vm51_vm4, %v41_v5  ;;  %p224_p5 = por %p223_p4, %p222_p3 }
  0x2f   :  { %p225_p6 = pnand %p224_p5, %p218_p2 }
 0x100   :  { %v125_v7 = vpop.f32.mrb[0].mxu0 }
 0x101   :  { %v126_v8 = vadd.f32 %v147_v6, %v125_v7  ;;  %v159_v9 = vpop.f32.mrb[1].mxu0 }
 0x103   :  { %130 = vst.msk [vmem:[#allocation7] sm:$0xff] %vm129_vm5, %v126_v8 }
 0x104   :  { %228 = shalt.err (!%p225_p6)
}
 0x105   :  { %s229_s16 = scalar_lea.hbm %s323_s3, 128 }
 0x106   :  { %p230_p7 = scmp.ne.s32.totalorder %s323_s3, %s229_s16  ;;  %p233_p8 = scmp.lt.u32.totalorder %s229_s16, %s323_s3 }
 0x108   :  { %p235_p9 = pnand %p233_p8, %p230_p7 }
 0x10a   :  { %238 = shalt.err (!%p235_p9)
}
 0x10b   :  { %140 = dma.vmem_to_hbm [thread:$0]  %s138_s12, 128, %s323_s3, [#allocation4]  }
 0x10c   :  { %243 = dma.done.wait [#allocation4], 128  }
 0x10d   :  { %244 = vsyncadd [#allocation4], 4294967168 }
 0x10e   :  { %144 = vsyncpa [#allocation3], 1 }
 0x10f   :  { %145 = vsyncpa [#allocation6], 1 }
 0x110   :  { %146 = vsyncpa [#allocation4], 1 }

</bundles_post_ra>
